<compile_context>
chip_gen: v6e
topology: v6e:2x2x1
jax: 0.10.0
libtpu: 0.0.40
codegen_flags: <defaults>
</compile_context>

<pallas_src>
import functools

import jax
import jax.numpy as jnp
from jax import lax
from jax.experimental import pallas as pl
from jax.experimental.pallas import tpu as pltpu


def _round_up(x, m):
    return pl.cdiv(x, m) * m


def _additive_attention_kernel(maskb_ref, ctx_ref, vw_ref, vb_ref, qw_ref,
                               out_ref, alpha_ref):
    # maskb_ref: (Bt, Lp) f32 additive bias (0 keep / -1e30 masked+padded)
    # ctx_ref  : (Bt, Lp, D1p) f32
    # vw_ref   : (D2p, D1p) f32   (V.weight, PyTorch layout (dim2, dim1))
    # vb_ref   : (D2p, 1)   f32   (V.bias as a column)
    # qw_ref   : (1, D2p)   f32   (qw^T as a row)
    vw = vw_ref[...]
    vb = vb_ref[...]
    qw = qw_ref[...]
    bt = ctx_ref.shape[0]

    for j in range(bt):                       # static unroll over the batch tile
        ctx_b = ctx_ref[j]                    # (Lp, D1p)

        # x^T = tanh(W_V @ ctx_b^T + b_V) -> (D2p, Lp)
        # (contract dim1 of both operands; no explicit transpose needed)
        xt = jnp.tanh(
            lax.dot_general(vw, ctx_b, (((1,), (1,)), ((), ())),
                            preferred_element_type=jnp.float32) + vb)

        # logits: qw^T @ x^T -> (1, Lp), L on lanes; additive mask bias
        a = jnp.dot(qw, xt, preferred_element_type=jnp.float32)
        a = a + maskb_ref[pl.ds(j, 1), :]

        # numerically stable softmax over lanes
        m = jnp.max(a, axis=-1, keepdims=True)
        e = jnp.exp(a - m)
        l = jnp.sum(e, axis=-1, keepdims=True)
        alpha = e * pl.reciprocal(l, approx=False)

        # weighted sum of context rows: (1, Lp) @ (Lp, D1p) -> (1, D1p)
        out = jnp.dot(alpha, ctx_b, preferred_element_type=jnp.float32)

        out_ref[pl.ds(j, 1), :] = out.astype(out_ref.dtype)
        alpha_ref[pl.ds(j, 1), :] = alpha.astype(alpha_ref.dtype)


@functools.partial(jax.jit, static_argnames=())
def additive_attention(context, v_weight, v_bias, qw, mask=None):
    """context: [B, L, dim1] f32, mask: [B, L] bool (True = keep) or None.

    Returns (out [B, dim1], alpha [B, L]) matching AdditiveAttention.forward.
    """
    B, L, D1 = context.shape
    D2 = v_weight.shape[0]

    LANE = 128
    Lp = _round_up(L, LANE)
    D1p = _round_up(D1, LANE)
    D2p = _round_up(D2, LANE)

    # batch tile: keep at most 8 batches per grid step (sublane granularity)
    Bt = B if B <= 8 else 8
    Bp = _round_up(B, Bt)

    if mask is None:
        keep = jnp.ones((B, L), dtype=bool)
    else:
        keep = mask.astype(bool)

    # additive mask bias; padding (both L and batch padding) is fully masked
    bias = jnp.where(keep, 0.0, -1e30).astype(jnp.float32)
    bias = jnp.pad(bias, ((0, Bp - B), (0, Lp - L)), constant_values=-1e30)

    ctx_p = jnp.pad(context.astype(jnp.float32),
                    ((0, Bp - B), (0, Lp - L), (0, D1p - D1)))
    vw_p = jnp.pad(v_weight.astype(jnp.float32),
                   ((0, D2p - D2), (0, D1p - D1)))
    vb_p = jnp.pad(v_bias.astype(jnp.float32), (0, D2p - D2)).reshape(D2p, 1)
    qw_p = jnp.pad(qw.astype(jnp.float32).reshape(-1),
                   (0, D2p - D2)).reshape(1, D2p)

    grid = (Bp // Bt,)
    out_p, alpha_p = pl.pallas_call(
        _additive_attention_kernel,
        out_shape=(jax.ShapeDtypeStruct((Bp, D1p), jnp.float32),
                   jax.ShapeDtypeStruct((Bp, Lp), jnp.float32)),
        grid_spec=pltpu.PrefetchScalarGridSpec(
            num_scalar_prefetch=0,
            grid=grid,
            in_specs=[
                pl.BlockSpec((Bt, Lp), lambda i: (i, 0)),          # mask bias
                pl.BlockSpec((Bt, Lp, D1p), lambda i: (i, 0, 0)),  # context
                pl.BlockSpec((D2p, D1p), lambda i: (0, 0)),        # V.weight
                pl.BlockSpec((D2p, 1), lambda i: (0, 0)),          # V.bias col
                pl.BlockSpec((1, D2p), lambda i: (0, 0)),          # qw row
            ],
            out_specs=[
                pl.BlockSpec((Bt, D1p), lambda i: (i, 0)),         # out
                pl.BlockSpec((Bt, Lp), lambda i: (i, 0)),          # alpha
            ],
        ),
        compiler_params=pltpu.CompilerParams(
            dimension_semantics=("parallel",),
            vmem_limit_bytes=64 * 1024 * 1024,
        ),
    )(bias, ctx_p, vw_p, vb_p, qw_p)

    # TODO(synk): a fully-masked row yields a uniform softmax over the padded
    # length Lp (reference is uniform over L); acceptable masked garbage,
    # identical to PyTorch only when at least one position is valid.
    return out_p[:B, :D1], alpha_p[:B, :L]


def _reference(context, v_weight, v_bias, qw, mask):
    x = jnp.tanh(context @ v_weight.T + v_bias)          # [B, L, dim2]
    a = jnp.squeeze(x @ qw, axis=-1)                      # [B, L]
    a = jnp.where(mask, a, jnp.finfo(x.dtype).min)
    alpha = jax.nn.softmax(a, axis=1)
    out = jnp.einsum('bl,bld->bd', alpha, context)        # [B, dim1]
    return out, alpha


if __name__ == "__main__":
    B, L, D1, D2 = 2, 16, 32, 32   # batch=2, seq=16, dim1=dim2=32

    key = jax.random.PRNGKey(0)
    k_ctx, k_mask, k_vw, k_qw = jax.random.split(key, 4)

    # Deterministic parameter init mirroring the PyTorch module:
    #   V = nn.Linear(dim1, dim2): xavier-uniform weight (dim2, dim1), zero bias
    #   qw = nn.Parameter((dim2, 1)) with xavier-uniform init
    limit_v = (6.0 / (D1 + D2)) ** 0.5
    v_weight = jax.random.uniform(k_vw, (D2, D1), jnp.float32, -limit_v, limit_v)
    v_bias = jnp.zeros((D2,), jnp.float32)
    limit_q = (6.0 / (D2 + 1)) ** 0.5
    qw = jax.random.uniform(k_qw, (D2, 1), jnp.float32, -limit_q, limit_q)

    context = jax.random.normal(k_ctx, (B, L, D1), jnp.float32)
    mask = (jax.random.uniform(k_mask, (B, L)) > 0.3)
    mask = mask.at[:, 0].set(True)   # every row has at least one valid position

    out, alpha = additive_attention(context, v_weight, v_bias, qw, mask)
    out = jax.block_until_ready(out)
    alpha = jax.block_until_ready(alpha)

    ref_out, ref_alpha = _reference(context, v_weight, v_bias, qw, mask)

    assert out.shape == (B, D1) and alpha.shape == (B, L)
    assert jnp.allclose(out, ref_out, atol=1e-4, rtol=1e-4)
    assert jnp.allclose(alpha, ref_alpha, atol=1e-4, rtol=1e-4)
    # masked positions must get (near-)zero weight
    assert jnp.all(jnp.where(mask, 0.0, alpha) < 1e-6)

    print("KERNEL_OK")
</pallas_src>

<mosaic_0001>
module attributes {stable_mosaic.version = 11 : i64} {
  func.func @_additive_attention_kernel(%arg0: i32, %arg1: memref<2x128xf32, #tpu.memory_space<vmem>>, %arg2: memref<2x128x128xf32, #tpu.memory_space<vmem>>, %arg3: memref<128x128xf32, #tpu.memory_space<vmem>>, %arg4: memref<128x1xf32, #tpu.memory_space<vmem>>, %arg5: memref<1x128xf32, #tpu.memory_space<vmem>>, %arg6: memref<2x128xf32, #tpu.memory_space<vmem>>, %arg7: memref<2x128xf32, #tpu.memory_space<vmem>>) attributes {dimension_semantics = [#tpu.dimension_semantics<parallel>], iteration_bounds = array<i64: 1>, scalar_prefetch = 0 : i64, scratch_operands = 0 : i64, tpu.core_type = #tpu.core_type<tc>, window_params = [{transform_indices = @transform_0, window_bounds = array<i64: 2, 128>}, {transform_indices = @transform_1, window_bounds = array<i64: 2, 128, 128>}, {pipeline_mode = #tpu.pipeline_mode<synchronous>, transform_indices = @transform_2, window_bounds = array<i64: 128, 128>}, {pipeline_mode = #tpu.pipeline_mode<synchronous>, transform_indices = @transform_3, window_bounds = array<i64: 128, 1>}, {pipeline_mode = #tpu.pipeline_mode<synchronous>, transform_indices = @transform_4, window_bounds = array<i64: 1, 128>}, {transform_indices = @transform_5, window_bounds = array<i64: 2, 128>}, {transform_indices = @transform_6, window_bounds = array<i64: 2, 128>}]} {
    %c0 = arith.constant 0 : index
    %c0_0 = arith.constant 0 : index
    %0 = vector.load %arg3[%c0, %c0_0] : memref<128x128xf32, #tpu.memory_space<vmem>>, vector<128x128xf32>
    %c0_1 = arith.constant 0 : index
    %c0_2 = arith.constant 0 : index
    %1 = vector.load %arg4[%c0_1, %c0_2] : memref<128x1xf32, #tpu.memory_space<vmem>>, vector<128x1xf32>
    %c0_3 = arith.constant 0 : index
    %c0_4 = arith.constant 0 : index
    %2 = vector.load %arg5[%c0_3, %c0_4] : memref<1x128xf32, #tpu.memory_space<vmem>>, vector<1x128xf32>
    %c0_5 = arith.constant 0 : index
    %c0_6 = arith.constant 0 : index
    %c0_7 = arith.constant 0 : index
    %3 = vector.load %arg2[%c0_5, %c0_6, %c0_7] : memref<2x128x128xf32, #tpu.memory_space<vmem>>, vector<1x128x128xf32>
    %4 = vector.shape_cast %3 : vector<1x128x128xf32> to vector<128x128xf32>
    %cst = arith.constant dense<0.000000e+00> : vector<128x128xf32>
    %5 = tpu.matmul %0, %4, %cst {dimension_numbers = #tpu.dot_dimension_numbers<[1], [1], [0], [0], [0, 0, 1, 0], [], []>} : vector<128x128xf32>, vector<128x128xf32>, vector<128x128xf32> -> vector<128x128xf32>
    %6 = vector.broadcast %1 : vector<128x1xf32> to vector<128x128xf32>
    %7 = arith.addf %5, %6 : vector<128x128xf32>
    %8 = math.tanh %7 : vector<128x128xf32>
    %cst_8 = arith.constant dense<0.000000e+00> : vector<1x128xf32>
    %9 = tpu.matmul %2, %8, %cst_8 {dimension_numbers = #tpu.dot_dimension_numbers<[1], [0], [0], [1], [0, 0, 1, 1], [], []>} : vector<1x128xf32>, vector<128x128xf32>, vector<1x128xf32> -> vector<1x128xf32>
    %c0_9 = arith.constant 0 : index
    %c0_10 = arith.constant 0 : index
    %10 = vector.load %arg1[%c0_9, %c0_10] : memref<2x128xf32, #tpu.memory_space<vmem>>, vector<1x128xf32>
    %11 = arith.addf %9, %10 : vector<1x128xf32>
    %cst_11 = arith.constant dense<0xFF800000> : vector<1xf32>
    %12 = vector.multi_reduction <maximumf>, %11, %cst_11 [1] : vector<1x128xf32> to vector<1xf32>
    %13 = vector.shape_cast %12 : vector<1xf32> to vector<1x1xf32>
    %14 = vector.broadcast %13 : vector<1x1xf32> to vector<1x128xf32>
    %15 = arith.subf %11, %14 : vector<1x128xf32>
    %16 = math.exp %15 : vector<1x128xf32>
    %cst_12 = arith.constant dense<0.000000e+00> : vector<1xf32>
    %17 = vector.multi_reduction <add>, %16, %cst_12 [1] : vector<1x128xf32> to vector<1xf32>
    %18 = vector.shape_cast %17 : vector<1xf32> to vector<1x1xf32>
    %19 = tpu.reciprocal %18 : vector<1x1xf32> -> vector<1x1xf32>
    %20 = vector.broadcast %19 : vector<1x1xf32> to vector<1x128xf32>
    %21 = arith.mulf %16, %20 : vector<1x128xf32>
    %cst_13 = arith.constant dense<0.000000e+00> : vector<1x128xf32>
    %22 = tpu.matmul %21, %4, %cst_13 {dimension_numbers = #tpu.dot_dimension_numbers<[1], [0], [0], [1], [0, 0, 1, 1], [], []>} : vector<1x128xf32>, vector<128x128xf32>, vector<1x128xf32> -> vector<1x128xf32>
    %c0_14 = arith.constant 0 : index
    %c0_15 = arith.constant 0 : index
    %23 = vector.load %arg6[%c0_14, %c0_15] : memref<2x128xf32, #tpu.memory_space<vmem>>, vector<1x128xf32>
    tpu.vector_store %arg6[%c0_14, %c0_15], %22 {strides = array<i32>} : memref<2x128xf32, #tpu.memory_space<vmem>>, vector<1x128xf32>,
    %c0_16 = arith.constant 0 : index
    %c0_17 = arith.constant 0 : index
    %24 = vector.load %arg7[%c0_16, %c0_17] : memref<2x128xf32, #tpu.memory_space<vmem>>, vector<1x128xf32>
    tpu.vector_store %arg7[%c0_16, %c0_17], %21 {strides = array<i32>} : memref<2x128xf32, #tpu.memory_space<vmem>>, vector<1x128xf32>,
    %c1 = arith.constant 1 : index
    %c0_18 = arith.constant 0 : index
    %c0_19 = arith.constant 0 : index
    %25 = vector.load %arg2[%c1, %c0_18, %c0_19] : memref<2x128x128xf32, #tpu.memory_space<vmem>>, vector<1x128x128xf32>
    %26 = vector.shape_cast %25 : vector<1x128x128xf32> to vector<128x128xf32>
    %cst_20 = arith.constant dense<0.000000e+00> : vector<128x128xf32>
    %27 = tpu.matmul %0, %26, %cst_20 {dimension_numbers = #tpu.dot_dimension_numbers<[1], [1], [0], [0], [0, 0, 1, 0], [], []>} : vector<128x128xf32>, vector<128x128xf32>, vector<128x128xf32> -> vector<128x128xf32>
    %28 = vector.broadcast %1 : vector<128x1xf32> to vector<128x128xf32>
    %29 = arith.addf %27, %28 : vector<128x128xf32>
    %30 = math.tanh %29 : vector<128x128xf32>
    %cst_21 = arith.constant dense<0.000000e+00> : vector<1x128xf32>
    %31 = tpu.matmul %2, %30, %cst_21 {dimension_numbers = #tpu.dot_dimension_numbers<[1], [0], [0], [1], [0, 0, 1, 1], [], []>} : vector<1x128xf32>, vector<128x128xf32>, vector<1x128xf32> -> vector<1x128xf32>
    %c1_22 = arith.constant 1 : index
    %c0_23 = arith.constant 0 : index
    %32 = vector.load %arg1[%c1_22, %c0_23] : memref<2x128xf32, #tpu.memory_space<vmem>>, vector<1x128xf32>
    %33 = arith.addf %31, %32 : vector<1x128xf32>
    %cst_24 = arith.constant dense<0xFF800000> : vector<1xf32>
    %34 = vector.multi_reduction <maximumf>, %33, %cst_24 [1] : vector<1x128xf32> to vector<1xf32>
    %35 = vector.shape_cast %34 : vector<1xf32> to vector<1x1xf32>
    %36 = vector.broadcast %35 : vector<1x1xf32> to vector<1x128xf32>
    %37 = arith.subf %33, %36 : vector<1x128xf32>
    %38 = math.exp %37 : vector<1x128xf32>
    %cst_25 = arith.constant dense<0.000000e+00> : vector<1xf32>
    %39 = vector.multi_reduction <add>, %38, %cst_25 [1] : vector<1x128xf32> to vector<1xf32>
    %40 = vector.shape_cast %39 : vector<1xf32> to vector<1x1xf32>
    %41 = tpu.reciprocal %40 : vector<1x1xf32> -> vector<1x1xf32>
    %42 = vector.broadcast %41 : vector<1x1xf32> to vector<1x128xf32>
    %43 = arith.mulf %38, %42 : vector<1x128xf32>
    %cst_26 = arith.constant dense<0.000000e+00> : vector<1x128xf32>
    %44 = tpu.matmul %43, %26, %cst_26 {dimension_numbers = #tpu.dot_dimension_numbers<[1], [0], [0], [1], [0, 0, 1, 1], [], []>} : vector<1x128xf32>, vector<128x128xf32>, vector<1x128xf32> -> vector<1x128xf32>
    %c1_27 = arith.constant 1 : index
    %c0_28 = arith.constant 0 : index
    %45 = vector.load %arg6[%c1_27, %c0_28] : memref<2x128xf32, #tpu.memory_space<vmem>>, vector<1x128xf32>
    tpu.vector_store %arg6[%c1_27, %c0_28], %44 {strides = array<i32>} : memref<2x128xf32, #tpu.memory_space<vmem>>, vector<1x128xf32>,
    %c1_29 = arith.constant 1 : index
    %c0_30 = arith.constant 0 : index
    %46 = vector.load %arg7[%c1_29, %c0_30] : memref<2x128xf32, #tpu.memory_space<vmem>>, vector<1x128xf32>
    tpu.vector_store %arg7[%c1_29, %c0_30], %43 {strides = array<i32>} : memref<2x128xf32, #tpu.memory_space<vmem>>, vector<1x128xf32>,
    return
  }
  func.func @transform_0(%arg0: i32) -> (i32, i32) {
    %c0_i32 = arith.constant 0 : i32
    %c0_i32_0 = arith.constant 0 : i32
    return %arg0, %c0_i32 : i32, i32
  }
  func.func @transform_1(%arg0: i32) -> (i32, i32, i32) {
    %c0_i32 = arith.constant 0 : i32
    %c0_i32_0 = arith.constant 0 : i32
    %c0_i32_1 = arith.constant 0 : i32
    return %arg0, %c0_i32, %c0_i32_0 : i32, i32, i32
  }
  func.func @transform_2(%arg0: i32) -> (i32, i32) {
    %c0_i32 = arith.constant 0 : i32
    %c0_i32_0 = arith.constant 0 : i32
    %c0_i32_1 = arith.constant 0 : i32
    return %c0_i32, %c0_i32_0 : i32, i32
  }
  func.func @transform_3(%arg0: i32) -> (i32, i32) {
    %c0_i32 = arith.constant 0 : i32
    %c0_i32_0 = arith.constant 0 : i32
    %c0_i32_1 = arith.constant 0 : i32
    return %c0_i32, %c0_i32_0 : i32, i32
  }
  func.func @transform_4(%arg0: i32) -> (i32, i32) {
    %c0_i32 = arith.constant 0 : i32
    %c0_i32_0 = arith.constant 0 : i32
    %c0_i32_1 = arith.constant 0 : i32
    return %c0_i32, %c0_i32_0 : i32, i32
  }
  func.func @transform_5(%arg0: i32) -> (i32, i32) {
    %c0_i32 = arith.constant 0 : i32
    %c0_i32_0 = arith.constant 0 : i32
    return %arg0, %c0_i32 : i32, i32
  }
  func.func @transform_6(%arg0: i32) -> (i32, i32) {
    %c0_i32 = arith.constant 0 : i32
    %c0_i32_0 = arith.constant 0 : i32
    return %arg0, %c0_i32 : i32, i32
  }
}

</mosaic_0001>

<bundles_post_ra>
// kernel: additive_attention.1
= control target key start
LH: loop header
LB: loop body
LE: loop exit
PB: predicated region body
PF: predicated region fallthrough
CT: control target
= control target key end

     0   :  { %12 = vsyncpa [#allocation3], 0  ;;  %v1352_v2 = vmov 0   ;;  %s1946_s0 = inlined_call_operand.vmem [shape: f32[2,128], index: 0, kind: input, shape index: {}]   ;;  %s1947_s1 = inlined_call_operand.vmem [shape: f32[2,128,128], index: 1, kind: input, shape index: {}]   ;;  %s1948_s2 = inlined_call_operand.vmem [shape: f32[128,128], index: 2, kind: input, shape index: {}]   ;;  %s1949_s3 = inlined_call_operand.vmem [shape: f32[128,1], index: 3, kind: input, shape index: {}]   ;;  %s1950_s4 = inlined_call_operand.vmem [shape: f32[1,128], index: 4, kind: input, shape index: {}]   ;;  %s1951_s5 = inlined_call_operand.hbm [shape: f32[2,128], index: 5, kind: output, shape index: {0}]   ;;  %s1952_s6 = inlined_call_operand.hbm [shape: f32[2,128], index: 6, kind: output, shape index: {1}]  }
   0x1   :  { %v1395_v0 = vld [vmem:[%s1947_s1 + $0x78] sm:$0xff]  ;;  %v1400_v1 = vld [vmem:[%s1947_s1 + $0x70] sm:$0xff]  ;;  %1234 = vset.pattern.permute.xlu0 %v1352_v2  ;;  %1235 = vset.pattern.permute.xlu1 %v1352_v2  ;;  %v1408_v3 = vld [vmem:[%s1947_s1 + $0x68] sm:$0xff] }
   0x2   :  { %977 = vmatprep.subr.mxu0 %v1395_v0  ;;  %v1413_v4 = vld [vmem:[%s1948_s2] sm:$0xff]  ;;  %v1428_v6 = vld [vmem:[%s1947_s1 + $0x58] sm:$0xff]  ;;  %v53_v8 = vld [vmem:[%s1949_s3 + $0x68] sm:$0xff] }
   0x3   :  { %978 = vmatpush3.xpose.msra.mxu0 %v1395_v0  ;;  %1009 = vmatprep.mubr.f32.mxu0 %v1413_v4  ;;  %v1421_v5 = vld [vmem:[%s1947_s1 + $0x60] sm:$0xff]  ;;  %v55_v7 = vld [vmem:[%s1949_s3 + $0x78] sm:$0xff]  ;;  %v1441_v9 = vld [vmem:[%s1947_s1 + $0x50] sm:$0xff] }
   0x4   :  { %979 = vmatprep.subr.mxu0 %v1400_v1  ;;  %150 = vperm.xlu0 %1234, %v55_v7   ;;  %v54_v10 = vld [vmem:[%s1949_s3 + $0x70] sm:$0xff]  ;;  %v52_v11 = vld [vmem:[%s1949_s3 + $0x60] sm:$0xff]  ;;  %v1454_v12 = vld [vmem:[%s1947_s1 + $0x48] sm:$0xff] }
   0x5   :  { %140 = vperm.xlu1 %1235, %v53_v8   ;;  %v51_v13 = vld [vmem:[%s1949_s3 + $0x58] sm:$0xff]  ;;  %v50_v14 = vld [vmem:[%s1949_s3 + $0x50] sm:$0xff] }
   0x7   :  { %980 = vmatpush3.xpose.msra.mxu0 %v1400_v1 }
   0x8   :  { %981 = vmatprep.subr.mxu0 %v1408_v3  ;;  %145 = vperm.xlu0 %1234, %v54_v10  }
   0x9   :  { %135 = vperm.xlu1 %1235, %v52_v11  }
   0xb   :  { %982 = vmatpush3.xpose.msra.mxu0 %v1408_v3 }
   0xc   :  { %983 = vmatprep.subr.mxu0 %v1421_v5 }
   0xf   :  { %984 = vmatpush3.xpose.msra.mxu0 %v1421_v5 }
  0x10   :  { %985 = vmatprep.subr.mxu0 %v1428_v6 }
  0x13   :  { %986 = vmatpush3.xpose.msra.mxu0 %v1428_v6 }
  0x14   :  { %987 = vmatprep.subr.mxu0 %v1441_v9 }
  0x15   :  { %13 = vsyncpa [#allocation5], 0  ;;  %130 = vperm.xlu0 %1234, %v51_v13   ;;  %v1467_v15 = vld [vmem:[%s1947_s1 + $0x40] sm:$0xff]  ;;  %125 = vperm.xlu1 %1235, %v50_v14   ;;  %v49_v16 = vld [vmem:[%s1949_s3 + $0x48] sm:$0xff]  ;;  %vm1354_vm0 = vmmov 0   ;;  %vm385_vm1 = vcmask 1040384  }
  0x16   :  { %v48_v17 = vld [vmem:[%s1949_s3 + $0x40] sm:$0xff]  ;;  %v1480_v18 = vld [vmem:[%s1947_s1 + $0x38] sm:$0xff]  ;;  %v46_v20 = vld [vmem:[%s1949_s3 + $0x30] sm:$0xff] }
  0x17   :  { %988 = vmatpush3.xpose.msra.mxu0 %v1441_v9  ;;  %v47_v19 = vld [vmem:[%s1949_s3 + $0x38] sm:$0xff]  ;;  %v1493_v21 = vld [vmem:[%s1947_s1 + $0x30] sm:$0xff]  ;;  %v45_v22 = vld [vmem:[%s1949_s3 + $0x28] sm:$0xff] }
  0x18   :  { %989 = vmatprep.subr.mxu0 %v1454_v12  ;;  %v44_v23 = vld [vmem:[%s1949_s3 + $0x20] sm:$0xff]  ;;  %v1506_v24 = vld [vmem:[%s1947_s1 + $0x28] sm:$0xff]  ;;  %v43_v25 = vld [vmem:[%s1949_s3 + $0x18] sm:$0xff] }
  0x19   :  { %120 = vperm.xlu0 %1234, %v49_v16   ;;  %115 = vperm.xlu1 %1235, %v48_v17   ;;  %v42_v26 = vld [vmem:[%s1949_s3 + $0x10] sm:$0xff]  ;;  %v1519_v27 = vld [vmem:[%s1947_s1 + $0x20] sm:$0xff]  ;;  %v41_v28 = vld [vmem:[%s1949_s3 + $0x8] sm:$0xff] }
  0x1a   :  { %v40_v29 = vld [vmem:[%s1949_s3] sm:$0xff]  ;;  %v1532_v30 = vld [vmem:[%s1947_s1 + $0x18] sm:$0xff]  ;;  %v1539_v31 = vld [vmem:[%s1947_s1 + $0x10] sm:$0xff] }
  0x1b   :  { %990 = vmatpush3.xpose.msra.mxu0 %v1454_v12  ;;  %v1546_v32 = vld [vmem:[%s1947_s1 + $0x8] sm:$0xff]  ;;  %v1553_v33 = vld [vmem:[%s1947_s1] sm:$0xff]  ;;  %v1560_v34 = vld [vmem:[%s1947_s1 + $0xf8] sm:$0xff] }
  0x1c   :  { %991 = vmatprep.subr.mxu0 %v1467_v15  ;;  %v1566_v35 = vld [vmem:[%s1948_s2 + $0x8] sm:$0xff]  ;;  %v1572_v36 = vld [vmem:[%s1948_s2 + $0x10] sm:$0xff]  ;;  %v1585_v38 = vld [vmem:[%s1948_s2 + $0x18] sm:$0xff] }
  0x1d   :  { %110 = vperm.xlu0 %1234, %v47_v19   ;;  %105 = vperm.xlu1 %1235, %v46_v20   ;;  %v1577_v37 = vld [vmem:[%s1947_s1 + $0xf0] sm:$0xff]  ;;  %v1591_v39 = vld [vmem:[%s1948_s2 + $0x20] sm:$0xff]  ;;  %v1596_v40 = vld [vmem:[%s1947_s1 + $0xe8] sm:$0xff] }
  0x1e   :  { %v1604_v41 = vld [vmem:[%s1948_s2 + $0x28] sm:$0xff]  ;;  %v1610_v42 = vld [vmem:[%s1948_s2 + $0x30] sm:$0xff]  ;;  %v1615_v43 = vld [vmem:[%s1947_s1 + $0xe0] sm:$0xff] }
  0x1f   :  { %992 = vmatpush3.xpose.msra.mxu0 %v1467_v15  ;;  %v31_v44 = vld [vmem:[%s1948_s2 + $0x38] sm:$0xff]  ;;  %v32_v45 = vld [vmem:[%s1948_s2 + $0x40] sm:$0xff]  ;;  %v33_v47 = vld [vmem:[%s1948_s2 + $0x48] sm:$0xff] }
  0x20   :  { %993 = vmatprep.subr.mxu0 %v1480_v18  ;;  %v1630_v46 = vld [vmem:[%s1947_s1 + $0xd8] sm:$0xff]  ;;  %v34_v48 = vld [vmem:[%s1948_s2 + $0x50] sm:$0xff]  ;;  %v36_v51 = vld [vmem:[%s1948_s2 + $0x60] sm:$0xff] }
  0x21   :  { %100 = vperm.xlu0 %1234, %v45_v22   ;;  %95 = vperm.xlu1 %1235, %v44_v23   ;;  %v1643_v49 = vld [vmem:[%s1947_s1 + $0xd0] sm:$0xff]  ;;  %v35_v50 = vld [vmem:[%s1948_s2 + $0x58] sm:$0xff]  ;;  %v1656_v52 = vld [vmem:[%s1947_s1 + $0xc8] sm:$0xff] }
  0x22   :  { %v37_v53 = vld [vmem:[%s1948_s2 + $0x68] sm:$0xff]  ;;  %v38_v54 = vld [vmem:[%s1948_s2 + $0x70] sm:$0xff]  ;;  %v1669_v55 = vld [vmem:[%s1947_s1 + $0xc0] sm:$0xff] }
  0x23   :  { %994 = vmatpush3.xpose.msra.mxu0 %v1480_v18  ;;  %v39_v56 = vld [vmem:[%s1948_s2 + $0x78] sm:$0xff]  ;;  %v1687_v58 = vld [vmem:[%s1947_s1 + $0xb0] sm:$0xff]  ;;  %v1694_v59 = vld [vmem:[%s1947_s1 + $0xa8] sm:$0xff] }
  0x24   :  { %995 = vmatprep.subr.mxu0 %v1493_v21  ;;  %v1679_v57 = vld [vmem:[%s1947_s1 + $0xb8] sm:$0xff]  ;;  %v1701_v60 = vld [vmem:[%s1947_s1 + $0xa0] sm:$0xff]  ;;  %v1715_v62 = vld [vmem:[%s1947_s1 + $0x90] sm:$0xff] }
  0x25   :  { %90 = vperm.xlu0 %1234, %v43_v25   ;;  %85 = vperm.xlu1 %1235, %v42_v26   ;;  %v1708_v61 = vld [vmem:[%s1947_s1 + $0x98] sm:$0xff]  ;;  %v1722_v63 = vld [vmem:[%s1947_s1 + $0x88] sm:$0xff]  ;;  %v1729_v2 = vld [vmem:[%s1947_s1 + $0x80] sm:$0xff] }
  0x27   :  { %996 = vmatpush3.xpose.msra.mxu0 %v1493_v21 }
  0x28   :  { %997 = vmatprep.subr.mxu0 %v1506_v24 }
  0x29   :  { %80 = vperm.xlu0 %1234, %v41_v28   ;;  %75 = vperm.xlu1 %1235, %v40_v29  }
  0x2b   :  { %998 = vmatpush3.xpose.msra.mxu0 %v1506_v24 }
  0x2c   :  { %999 = vmatprep.subr.mxu0 %v1519_v27 }
  0x2f   :  { %1000 = vmatpush3.xpose.msra.mxu0 %v1519_v27 }
  0x30   :  { %1001 = vmatprep.subr.mxu0 %v1532_v30 }
  0x33   :  { %1002 = vmatpush3.xpose.msra.mxu0 %v1532_v30 }
  0x34   :  { %1003 = vmatprep.subr.mxu0 %v1539_v31 }
  0x37   :  { %1004 = vmatpush3.xpose.msra.mxu0 %v1539_v31 }
  0x38   :  { %1005 = vmatprep.subr.mxu0 %v1546_v32 }
  0x3b   :  { %1006 = vmatpush3.xpose.msra.mxu0 %v1546_v32 }
  0x3c   :  { %1007 = vmatprep.subr.mxu0 %v1553_v33 }
  0x3f   :  { %1008 = vmatpush3.xpose.msra.mxu0 %v1553_v33 }
  0x40   :  { %1103 = vmatprep.subr.mxu0 %v1560_v34 }
  0x42   :  { %1010 = vmatmul.mubr.f32.vlgmr.msra.gmra.mxu0 %v1566_v35 }
  0x43   :  { %1104 = vmatpush3.xpose.msra.mxu0 %v1560_v34  ;;  %1012 = vmatprep.mubr.f32.mxu0 %v1572_v36 }
  0x44   :  { %1105 = vmatprep.subr.mxu0 %v1577_v37 }
  0x46   :  { %1013 = vmatmul.mubr.f32.gmra.mxu0 %v1585_v38 }
  0x47   :  { %1106 = vmatpush3.xpose.msra.mxu0 %v1577_v37  ;;  %1015 = vmatprep.mubr.f32.mxu0 %v1591_v39 }
  0x48   :  { %1107 = vmatprep.subr.mxu0 %v1596_v40 }
  0x4a   :  { %1016 = vmatmul.mubr.f32.gmra.mxu0 %v1604_v41 }
  0x4b   :  { %1108 = vmatpush3.xpose.msra.mxu0 %v1596_v40  ;;  %1018 = vmatprep.mubr.f32.mxu0 %v1610_v42 }
  0x4c   :  { %1109 = vmatprep.subr.mxu0 %v1615_v43 }
  0x4e   :  { %1019 = vmatmul.mubr.f32.gmra.mxu0 %v31_v44 }
  0x4f   :  { %1110 = vmatpush3.xpose.msra.mxu0 %v1615_v43  ;;  %1021 = vmatprep.mubr.f32.mxu0 %v32_v45 }
  0x50   :  { %1111 = vmatprep.subr.mxu0 %v1630_v46 }
  0x52   :  { %1022 = vmatmul.mubr.f32.gmra.mxu0 %v33_v47 }
  0x53   :  { %1112 = vmatpush3.xpose.msra.mxu0 %v1630_v46  ;;  %1024 = vmatprep.mubr.f32.mxu0 %v34_v48 }
  0x54   :  { %1113 = vmatprep.subr.mxu0 %v1643_v49 }
  0x56   :  { %1025 = vmatmul.mubr.f32.gmra.mxu0 %v35_v50 }
  0x57   :  { %1114 = vmatpush3.xpose.msra.mxu0 %v1643_v49  ;;  %1027 = vmatprep.mubr.f32.mxu0 %v36_v51 }
  0x58   :  { %1115 = vmatprep.subr.mxu0 %v1656_v52 }
  0x5a   :  { %1028 = vmatmul.mubr.f32.gmra.mxu0 %v37_v53 }
  0x5b   :  { %1116 = vmatpush3.xpose.msra.mxu0 %v1656_v52  ;;  %1030 = vmatprep.mubr.f32.mxu0 %v38_v54 }
  0x5c   :  { %1117 = vmatprep.subr.mxu0 %v1669_v55 }
  0x5e   :  { %1031 = vmatmul.mubr.f32.gmra.mxu0 %v39_v56 }
  0x5f   :  { %1118 = vmatpush3.xpose.msra.mxu0 %v1669_v55  ;;  %1135 = vmatprep.mubr.f32.mxu0 %v1413_v4  ;;  %v1953_v4 = vmov 0.0  }
  0x60   :  { %1119 = vmatprep.subr.mxu0 %v1679_v57  ;;  %1033 = vmatprep.subr.mxu1 %v1953_v4 }
  0x61   :  { %1065 = vmatprep.mubr.msk.f32.mxu1 %vm1354_vm0, %v1953_v4 }
  0x63   :  { %1120 = vmatpush3.xpose.msra.mxu0 %v1679_v57 }
  0x64   :  { %1121 = vmatprep.subr.mxu0 %v1687_v58 }
  0x67   :  { %1122 = vmatpush3.xpose.msra.mxu0 %v1687_v58 }
  0x68   :  { %1123 = vmatprep.subr.mxu0 %v1694_v59 }
  0x6b   :  { %1124 = vmatpush3.xpose.msra.mxu0 %v1694_v59 }
  0x6c   :  { %1125 = vmatprep.subr.mxu0 %v1701_v60 }
  0x6f   :  { %1126 = vmatpush3.xpose.msra.mxu0 %v1701_v60 }
  0x70   :  { %1127 = vmatprep.subr.mxu0 %v1708_v61 }
  0x73   :  { %1128 = vmatpush3.xpose.msra.mxu0 %v1708_v61 }
  0x74   :  { %1129 = vmatprep.subr.mxu0 %v1715_v62 }
  0x77   :  { %1130 = vmatpush3.xpose.msra.mxu0 %v1715_v62 }
  0x78   :  { %1131 = vmatprep.subr.mxu0 %v1722_v63 }
  0x7b   :  { %1132 = vmatpush3.xpose.msra.mxu0 %v1722_v63 }
  0x7c   :  { %1133 = vmatprep.subr.mxu0 %v1729_v2 }
  0x7f   :  { %1134 = vmatpush3.xpose.msra.mxu0 %v1729_v2  ;;  %v1749_v14 = vpop.permute.xlu0 %150 }
  0x80   :  { %v1751_v17 = vpop.permute.xlu1 %140 }
  0x82   :  { %1136 = vmatmul.mubr.f32.vlgmr.msra.gmra.mxu0 %v1566_v35 }
  0x83   :  { %1138 = vmatprep.mubr.f32.mxu0 %v1572_v36  ;;  %v1753_v22 = vpop.permute.xlu0 %145 }
  0x84   :  { %v1755_v25 = vpop.permute.xlu1 %135 }
  0x86   :  { %1139 = vmatmul.mubr.f32.gmra.mxu0 %v1585_v38 }
  0x87   :  { %1141 = vmatprep.mubr.f32.mxu0 %v1591_v39 }
  0x8a   :  { %1142 = vmatmul.mubr.f32.gmra.mxu0 %v1604_v41 }
  0x8b   :  { %1144 = vmatprep.mubr.f32.mxu0 %v1610_v42 }
  0x8e   :  { %1145 = vmatmul.mubr.f32.gmra.mxu0 %v31_v44 }
  0x8f   :  { %1147 = vmatprep.mubr.f32.mxu0 %v32_v45 }
  0x90   :  { %v1757_v29 = vpop.permute.xlu0 %130  ;;  %v1759_v36 = vpop.permute.xlu1 %125 }
  0x92   :  { %1148 = vmatmul.mubr.f32.gmra.mxu0 %v33_v47 }
  0x93   :  { %1150 = vmatprep.mubr.f32.mxu0 %v34_v48 }
  0x94   :  { %v1761_v41 = vpop.permute.xlu0 %120  ;;  %v1764_v45 = vpop.permute.xlu1 %115 }
  0x96   :  { %1151 = vmatmul.mubr.f32.gmra.mxu0 %v35_v50 }
  0x97   :  { %1153 = vmatprep.mubr.f32.mxu0 %v36_v51 }
  0x9a   :  { %1154 = vmatmul.mubr.f32.gmra.mxu0 %v37_v53  ;;  %v1769_v53 = vpop.permute.xlu0 %110 }
  0x9b   :  { %1156 = vmatprep.mubr.f32.mxu0 %v38_v54 }
  0x9e   :  { %1157 = vmatmul.mubr.f32.gmra.mxu0 %v39_v56  ;;  %v1772_v56 = vpop.permute.xlu1 %105 }
 0x102   :  { %v1743_v7 = vpop.f32.mrf.mxu0 }
 0x104   :  { %v1745_v8 = vpop.f32.mrf.mxu0 }
 0x106   :  { %v1014_v10 = vpop.f32.mrf.mxu0 }
 0x108   :  { %v1747_v11 = vpop.f32.mrf.mxu0 }
 0x10a   :  { %v1017_v13 = vpop.f32.mrf.mxu0 }
 0x10c   :  { %v239_v16 = vpop.f32.mrf.mxu0 }
 0x10e   :  { %v1020_v19 = vpop.f32.mrf.mxu0 }
 0x110   :  { %v249_v20 = vpop.f32.mrf.mxu0 }
 0x112   :  { %v1023_v23 = vpop.f32.mrf.mxu0 }
 0x113   :  { %v265_v4 = vadd.f32 %v1023_v23, %v1761_v41  ;;  %v1955_v23 = vmov 0.0  }
 0x114   :  { %v259_v26 = vpop.f32.mrf.mxu0 }
 0x116   :  { %v1026_v28 = vpop.f32.mrf.mxu0 }
 0x117   :  { %v275_v54 = vadd.f32 %v1026_v28, %v1757_v29 }
 0x118   :  { %v269_v35 = vpop.f32.mrf.mxu0 }
 0x11a   :  { %v1029_v38 = vpop.f32.mrf.mxu0 }
 0x11b   :  { %v285_v48 = vadd.f32 %v1029_v38, %v1751_v17  ;;  %v1776_v38 = vpop.permute.xlu0 %100 }
 0x11c   :  { %v279_v39 = vpop.f32.mrf.mxu0 }
 0x11d   :  { %v280_v51 = vadd.f32 %v279_v39, %v1755_v25  ;;  %v1779_v39 = vpop.permute.xlu1 %95 }
 0x11e   :  { %v1032_v42 = vpop.f32.mrf.mxu0 }
 0x11f   :  { %v295_v44 = vadd.f32 %v1032_v42, %v1749_v14  ;;  %v270_v42 = vadd.f32 %v269_v35, %v1759_v36 }
 0x120   :  { %v289_v47 = vpop.f32.mrf.mxu0 }
 0x121   :  { %1236 = vtanh.f32 %v295_v44  ;;  %v290_v50 = vadd.f32 %v289_v47, %v1753_v22  ;;  %v260_v44 = vadd.f32 %v259_v26, %v1764_v45  ;;  %v255_v47 = vadd.f32 %v1020_v19, %v1769_v53 }
 0x123   :  { %1238 = vtanh.f32 %v290_v50  ;;  %v1783_v50 = vpop.permute.xlu0 %90 }
 0x124   :  { %1240 = vtanh.f32 %v285_v48  ;;  %v250_v48 = vadd.f32 %v249_v20, %v1772_v56  ;;  %v235_v20 = vadd.f32 %v1014_v10, %v1783_v50 }
 0x125   :  { %1242 = vtanh.f32 %v280_v51  ;;  %v245_v51 = vadd.f32 %v1017_v13, %v1776_v38 }
 0x126   :  { %1244 = vtanh.f32 %v275_v54  ;;  %v1787_v54 = vpop.permute.xlu1 %85 }
 0x127   :  { %1246 = vtanh.f32 %v270_v42  ;;  %v1793_v13 = vpop.permute.xlu0 %80 }
 0x128   :  { %1248 = vtanh.f32 %v265_v4  ;;  %v240_v4 = vadd.f32 %v239_v16, %v1779_v39  ;;  %v225_v10 = vadd.f32 %v1743_v7, %v1793_v13 }
 0x129   :  { %1250 = vtanh.f32 %v260_v44  ;;  %v230_v44 = vadd.f32 %v1747_v11, %v1787_v54 }
 0x12a   :  { %1252 = vtanh.f32 %v255_v47  ;;  %v1798_v47 = vpop.permute.xlu1 %75 }
 0x12b   :  { %1254 = vtanh.f32 %v250_v48  ;;  %v220_v48 = vadd.f32 %v1745_v8, %v1798_v47 }
 0x12c   :  { %1256 = vtanh.f32 %v245_v51 }
 0x12d   :  { %1258 = vtanh.f32 %v240_v4 }
 0x12e   :  { %v1237_v28 = vpop.eup %1236  ;;  %1260 = vtanh.f32 %v235_v20  ;;  %v1817_v20 = vld [vmem:[%s1950_s4] sm:$0x1] }
 0x12f   :  { %1034 = vmatpush3.msra.mxu1 %v1237_v28  ;;  %1262 = vtanh.f32 %v230_v44 }
 0x130   :  { %v1239_v35 = vpop.eup %1238  ;;  %1035 = vmatprep.subr.mxu1 %v1955_v23  ;;  %1264 = vtanh.f32 %v225_v10 }
 0x131   :  { %1036 = vmatpush3.msra.mxu1 %v1239_v35  ;;  %v1241_v26 = vpop.eup %1240  ;;  %1266 = vtanh.f32 %v220_v48 }
 0x132   :  { %1037 = vmatprep.subr.mxu1 %v1955_v23  ;;  %v1243_v19 = vpop.eup %1242 }
 0x133   :  { %1038 = vmatpush3.msra.mxu1 %v1241_v26  ;;  %v1245_v42 = vpop.eup %1244 }
 0x134   :  { %1039 = vmatprep.subr.mxu1 %v1955_v23  ;;  %v1247_v16 = vpop.eup %1246 }
 0x135   :  { %1040 = vmatpush3.msra.mxu1 %v1243_v19  ;;  %v1249_v28 = vpop.eup %1248 }
 0x136   :  { %1041 = vmatprep.subr.mxu1 %v1955_v23  ;;  %v1251_v11 = vpop.eup %1250 }
 0x137   :  { %1042 = vmatpush3.msra.mxu1 %v1245_v42  ;;  %v1253_v35 = vpop.eup %1252 }
 0x138   :  { %1043 = vmatprep.subr.mxu1 %v1955_v23  ;;  %v1255_v7 = vpop.eup %1254 }
 0x139   :  { %1044 = vmatpush3.msra.mxu1 %v1247_v16  ;;  %v1257_v51 = vpop.eup %1256 }
 0x13a   :  { %1045 = vmatprep.subr.mxu1 %v1955_v23  ;;  %v1259_v8 = vpop.eup %1258 }
 0x13b   :  { %1046 = vmatpush3.msra.mxu1 %v1249_v28  ;;  %v1261_v26 = vpop.eup %1260 }
 0x13c   :  { %1047 = vmatprep.subr.mxu1 %v1955_v23  ;;  %v1263_v4 = vpop.eup %1262 }
 0x13d   :  { %1048 = vmatpush3.msra.mxu1 %v1251_v11  ;;  %v1265_v19 = vpop.eup %1264 }
 0x13e   :  { %1049 = vmatprep.subr.mxu1 %v1955_v23  ;;  %v1267_v42 = vpop.eup %1266 }
 0x13f   :  { %1050 = vmatpush3.msra.mxu1 %v1253_v35 }
 0x140   :  { %1051 = vmatprep.subr.mxu1 %v1955_v23 }
 0x141   :  { %1052 = vmatpush3.msra.mxu1 %v1255_v7 }
 0x142   :  { %1053 = vmatprep.subr.mxu1 %v1955_v23 }
 0x143   :  { %1054 = vmatpush3.msra.mxu1 %v1257_v51 }
 0x144   :  { %1055 = vmatprep.subr.mxu1 %v1955_v23 }
 0x145   :  { %1056 = vmatpush3.msra.mxu1 %v1259_v8 }
 0x146   :  { %1057 = vmatprep.subr.mxu1 %v1955_v23 }
 0x147   :  { %1058 = vmatpush3.msra.mxu1 %v1261_v26 }
 0x148   :  { %1059 = vmatprep.subr.mxu1 %v1955_v23 }
 0x149   :  { %1060 = vmatpush3.msra.mxu1 %v1263_v4 }
 0x14a   :  { %1061 = vmatprep.subr.mxu1 %v1955_v23 }
 0x14b   :  { %1062 = vmatpush3.msra.mxu1 %v1265_v19 }
 0x14c   :  { %1063 = vmatprep.subr.mxu1 %v1955_v23 }
 0x14d   :  { %1064 = vmatpush3.msra.mxu1 %v1267_v42 }
 0x14e   :  { %1066 = vmatmul.mubr.f32.vlgmr.msra.gmra.mxu1 %v1817_v20  ;;  %1068 = vmatprep.subr.mxu1 %v1955_v23 }
 0x14f   :  { %1069 = vmatpush3.msra.mxu1 %v1395_v0  ;;  %1100 = vmatprep.mubr.msk.f32.mxu1 %vm1354_vm0, %v1955_v23  ;;  %v314_v0 = vld [vmem:[%s1946_s0] sm:$0x1] }
 0x150   :  { %1070 = vmatprep.subr.mxu1 %v1955_v23 }
 0x151   :  { %1071 = vmatpush3.msra.mxu1 %v1400_v1 }
 0x152   :  { %1072 = vmatprep.subr.mxu1 %v1955_v23 }
 0x153   :  { %1073 = vmatpush3.msra.mxu1 %v1408_v3 }
 0x154   :  { %1074 = vmatprep.subr.mxu1 %v1955_v23 }
 0x155   :  { %1075 = vmatpush3.msra.mxu1 %v1421_v5 }
 0x156   :  { %1076 = vmatprep.subr.mxu1 %v1955_v23 }
 0x157   :  { %1077 = vmatpush3.msra.mxu1 %v1428_v6 }
 0x158   :  { %1078 = vmatprep.subr.mxu1 %v1955_v23 }
 0x159   :  { %1079 = vmatpush3.msra.mxu1 %v1441_v9 }
 0x15a   :  { %1080 = vmatprep.subr.mxu1 %v1955_v23 }
 0x15b   :  { %1081 = vmatpush3.msra.mxu1 %v1454_v12 }
 0x15c   :  { %1082 = vmatprep.subr.mxu1 %v1955_v23 }
 0x15d   :  { %1083 = vmatpush3.msra.mxu1 %v1467_v15 }
 0x15e   :  { %1084 = vmatprep.subr.mxu1 %v1955_v23 }
 0x15f   :  { %1085 = vmatpush3.msra.mxu1 %v1480_v18 }
 0x160   :  { %1086 = vmatprep.subr.mxu1 %v1955_v23 }
 0x161   :  { %1087 = vmatpush3.msra.mxu1 %v1493_v21 }
 0x162   :  { %1088 = vmatprep.subr.mxu1 %v1955_v23 }
 0x163   :  { %1089 = vmatpush3.msra.mxu1 %v1506_v24  ;;  %v1861_v24 = vpop.f32.mrf.mxu0 }
 0x164   :  { %1090 = vmatprep.subr.mxu1 %v1955_v23 }
 0x165   :  { %1091 = vmatpush3.msra.mxu1 %v1519_v27  ;;  %v1863_v27 = vpop.f32.mrf.mxu0 }
 0x166   :  { %1092 = vmatprep.subr.mxu1 %v1955_v23 }
 0x167   :  { %1093 = vmatpush3.msra.mxu1 %v1532_v30  ;;  %v1140_v30 = vpop.f32.mrf.mxu0 }
 0x168   :  { %1094 = vmatprep.subr.mxu1 %v1955_v23 }
 0x169   :  { %1095 = vmatpush3.msra.mxu1 %v1539_v31  ;;  %v562_v31 = vpop.f32.mrf.mxu0 }
 0x16a   :  { %1096 = vmatprep.subr.mxu1 %v1955_v23 }
 0x16b   :  { %1097 = vmatpush3.msra.mxu1 %v1546_v32  ;;  %v1143_v32 = vpop.f32.mrf.mxu0 }
 0x16c   :  { %1098 = vmatprep.subr.mxu1 %v1955_v23 }
 0x16d   :  { %1099 = vmatpush3.msra.mxu1 %v1553_v33  ;;  %v572_v33 = vpop.f32.mrf.mxu0 }
 0x16e   :  { %1159 = vmatprep.subr.mxu1 %v1955_v23 }
 0x16f   :  { %v1146_v44 = vpop.f32.mrf.mxu0 }
 0x171   :  { %v582_v16 = vpop.f32.mrf.mxu0 }
 0x173   :  { %v1149_v10 = vpop.f32.mrf.mxu0 }
 0x175   :  { %v592_v28 = vpop.f32.mrf.mxu0 }
 0x177   :  { %v1152_v48 = vpop.f32.mrf.mxu0 }
 0x179   :  { %v602_v11 = vpop.f32.mrf.mxu0 }
 0x17b   :  { %v1155_v35 = vpop.f32.mrf.mxu0 }
 0x17c   :  { %v618_v42 = vadd.f32 %v1155_v35, %v1751_v17  ;;  %v588_v17 = vadd.f32 %v1146_v44, %v1769_v53 }
 0x17d   :  { %v612_v7 = vpop.f32.mrf.mxu0 }
 0x17f   :  { %v1158_v51 = vpop.f32.mrf.mxu0 }
 0x180   :  { %v628_v26 = vadd.f32 %v1158_v51, %v1749_v14 }
 0x181   :  { %v622_v8 = vpop.f32.mrf.mxu0 }
 0x182   :  { %v623_v19 = vadd.f32 %v622_v8, %v1753_v22 }
 0x20e   :  { %v381_v1 = vpop.f32.mrf.mxu1 }
 0x20f   :  { %v382_v3 = vadd.f32 %v381_v1, %v314_v0  ;;  %v613_v0 = vadd.f32 %v612_v7, %v1755_v25  ;;  %v608_v1 = vadd.f32 %v1152_v48, %v1757_v29  ;;  %v583_v25 = vadd.f32 %v582_v16, %v1772_v56 }
 0x210   :  { %v1067_v5 = vpop.f32.mrf.mxu1  ;;  %v568_v56 = vadd.f32 %v1140_v30, %v1783_v50  ;;  %v553_v50 = vadd.f32 %v1863_v27, %v1798_v47 }
 0x211   :  { %v386_v6 = vsel %vm385_vm1, %v382_v3, -inf  ;;  %v598_v5 = vadd.f32 %v1149_v10, %v1761_v41 }
 0x212   :  { %387 = vmax.xlane.f32.xlu0 %v386_v6  ;;  %v593_v6 = vadd.f32 %v592_v28, %v1764_v45  ;;  %v573_v45 = vadd.f32 %v572_v33, %v1779_v39  ;;  %v558_v39 = vadd.f32 %v1861_v24, %v1793_v13 }
 0x29b   :  { %v388_v9 = vpop.xlane.xlu0 %387 }
 0x29c   :  { %v389_v12 = vsub.f32 %v382_v3, %v388_v9  ;;  %v603_v3 = vadd.f32 %v602_v11, %v1759_v36  ;;  %v578_v36 = vadd.f32 %v1143_v32, %v1776_v38  ;;  %v563_v38 = vadd.f32 %v562_v31, %v1787_v54 }
 0x29e   :  { %v390_v15 = vmul.f32 1.442695, %v389_v12 }
 0x2a0   :  { %1268 = vpow2.f32 %v390_v15 }
 0x2ad   :  { %v1269_v18 = vpop.eup %1268 }
 0x2ae   :  { %v392_v21 = vsel %vm385_vm1, %v1269_v18, 0.0 }
 0x2af   :  { %393 = vadd.xlane.f32.xlu1 %v392_v21 }
 0x338   :  { %v394_v4 = vpop.xlane.xlu1 %393 }
 0x339   :  { %1270 = vrcp.f32 %v394_v4 }
 0x33a   :  { %1272 = vtanh.f32 %v628_v26 }
 0x33b   :  { %1274 = vtanh.f32 %v623_v19 }
 0x33c   :  { %1276 = vtanh.f32 %v618_v42 }
 0x33d   :  { %1278 = vtanh.f32 %v613_v0 }
 0x33e   :  { %1280 = vtanh.f32 %v608_v1 }
 0x33f   :  { %1282 = vtanh.f32 %v603_v3 }
 0x340   :  { %1284 = vtanh.f32 %v598_v5 }
 0x341   :  { %1286 = vtanh.f32 %v593_v6 }
 0x342   :  { %1288 = vtanh.f32 %v588_v17 }
 0x343   :  { %1290 = vtanh.f32 %v583_v25 }
 0x344   :  { %1292 = vtanh.f32 %v578_v36 }
 0x345   :  { %1294 = vtanh.f32 %v573_v45 }
 0x346   :  { %v1271_v14 = vpop.eup %1270  ;;  %1296 = vtanh.f32 %v568_v56 }
 0x347   :  { %v396_v22 = vmul.f32 %v1271_v14, %v1269_v18  ;;  %v1273_v9 = vpop.eup %1272  ;;  %1298 = vtanh.f32 %v563_v38 }
 0x348   :  { %v1275_v29 = vpop.eup %1274  ;;  %1300 = vtanh.f32 %v558_v39 }
 0x349   :  { %1101 = vmatmul.mubr.f32.vlgmr.msra.gmra.mxu1 %v396_v22  ;;  %468 = vst [vmem:[#allocation4] sm:$0x1] %v396_v22  ;;  %v1277_v41 = vpop.eup %1276  ;;  %1302 = vtanh.f32 %v553_v50 }
 0x34a   :  { %1160 = vmatpush3.msra.mxu1 %v1273_v9  ;;  %1191 = vmatprep.mubr.msk.f32.mxu1 %vm1354_vm0, %v1955_v23  ;;  %v1279_v53 = vpop.eup %1278 }
 0x34b   :  { %1161 = vmatprep.subr.mxu1 %v1955_v23  ;;  %v1281_v12 = vpop.eup %1280 }
 0x34c   :  { %1162 = vmatpush3.msra.mxu1 %v1275_v29  ;;  %v1283_v15 = vpop.eup %1282 }
 0x34d   :  { %1163 = vmatprep.subr.mxu1 %v1955_v23  ;;  %v1285_v18 = vpop.eup %1284 }
 0x34e   :  { %1164 = vmatpush3.msra.mxu1 %v1277_v41  ;;  %v1287_v21 = vpop.eup %1286 }
 0x34f   :  { %1165 = vmatprep.subr.mxu1 %v1955_v23  ;;  %v1289_v54 = vpop.eup %1288 }
 0x350   :  { %1166 = vmatpush3.msra.mxu1 %v1279_v53  ;;  %v1291_v13 = vpop.eup %1290 }
 0x351   :  { %1167 = vmatprep.subr.mxu1 %v1955_v23  ;;  %v1293_v24 = vpop.eup %1292 }
 0x352   :  { %1168 = vmatpush3.msra.mxu1 %v1281_v12  ;;  %v1295_v47 = vpop.eup %1294 }
 0x353   :  { %1169 = vmatprep.subr.mxu1 %v1955_v23  ;;  %v1297_v27 = vpop.eup %1296 }
 0x354   :  { %1170 = vmatpush3.msra.mxu1 %v1283_v15  ;;  %v1299_v30 = vpop.eup %1298 }
 0x355   :  { %1171 = vmatprep.subr.mxu1 %v1955_v23  ;;  %v1301_v31 = vpop.eup %1300 }
 0x356   :  { %1172 = vmatpush3.msra.mxu1 %v1285_v18  ;;  %v1303_v32 = vpop.eup %1302 }
 0x357   :  { %1173 = vmatprep.subr.mxu1 %v1955_v23 }
 0x358   :  { %1174 = vmatpush3.msra.mxu1 %v1287_v21 }
 0x359   :  { %1175 = vmatprep.subr.mxu1 %v1955_v23 }
 0x35a   :  { %1176 = vmatpush3.msra.mxu1 %v1289_v54 }
 0x35b   :  { %1177 = vmatprep.subr.mxu1 %v1955_v23 }
 0x35c   :  { %1178 = vmatpush3.msra.mxu1 %v1291_v13 }
 0x35d   :  { %1179 = vmatprep.subr.mxu1 %v1955_v23 }
 0x35e   :  { %1180 = vmatpush3.msra.mxu1 %v1293_v24 }
 0x35f   :  { %1181 = vmatprep.subr.mxu1 %v1955_v23 }
 0x360   :  { %1182 = vmatpush3.msra.mxu1 %v1295_v47 }
 0x361   :  { %1183 = vmatprep.subr.mxu1 %v1955_v23 }
 0x362   :  { %1184 = vmatpush3.msra.mxu1 %v1297_v27 }
 0x363   :  { %1185 = vmatprep.subr.mxu1 %v1955_v23 }
 0x364   :  { %1186 = vmatpush3.msra.mxu1 %v1299_v30 }
 0x365   :  { %1187 = vmatprep.subr.mxu1 %v1955_v23 }
 0x366   :  { %1188 = vmatpush3.msra.mxu1 %v1301_v31 }
 0x367   :  { %1189 = vmatprep.subr.mxu1 %v1955_v23 }
 0x368   :  { %1190 = vmatpush3.msra.mxu1 %v1303_v32 }
 0x369   :  { %1192 = vmatmul.mubr.f32.vlgmr.msra.gmra.mxu1 %v1817_v20  ;;  %1194 = vmatprep.subr.mxu1 %v1955_v23 }
 0x36a   :  { %1195 = vmatpush3.msra.mxu1 %v1560_v34  ;;  %1226 = vmatprep.mubr.msk.f32.mxu1 %vm1354_vm0, %v1955_v23 }
 0x36b   :  { %1196 = vmatprep.subr.mxu1 %v1955_v23 }
 0x36c   :  { %1197 = vmatpush3.msra.mxu1 %v1577_v37 }
 0x36d   :  { %1198 = vmatprep.subr.mxu1 %v1955_v23 }
 0x36e   :  { %1199 = vmatpush3.msra.mxu1 %v1596_v40  ;;  %v647_v40 = vld [vmem:[%s1946_s0 + $0x1] sm:$0x1]  ;;  %s1355_s0 = smov [#allocation4]  }
 0x36f   :  { %1200 = vmatprep.subr.mxu1 %v1955_v23  ;;  %s817_s29 = sshll.u32 %s1355_s0, 4  ;;  %s818_s29 = int_to_ptr.vmem [resolvable:$true] %s817_s29 }
 0x370   :  { %1201 = vmatpush3.msra.mxu1 %v1615_v43  ;;  %s1308_s30 = scalar_lea.vmem %s818_s29, 32  ;;  %p1313_p1 = scmp.lt.s32.totalorder %s818_s29, %s818_s29 }
 0x371   :  { %1202 = vmatprep.subr.mxu1 %v1955_v23  ;;  %p1309_p0 = scmp.ne.s32.totalorder %s818_s29, %s1308_s30  ;;  %p1314_p2 = scmp.lt.s32.totalorder %s1308_s30, %s1308_s30 }
 0x372   :  { %1203 = vmatpush3.msra.mxu1 %v1630_v46 }
 0x373   :  { %1204 = vmatprep.subr.mxu1 %v1955_v23  ;;  %p1315_p3 = por %p1314_p2, %p1313_p1 }
 0x374   :  { %1205 = vmatpush3.msra.mxu1 %v1643_v49 }
 0x375   :  { %1206 = vmatprep.subr.mxu1 %v1955_v23  ;;  %p1316_p4 = pnand %p1315_p3, %p1309_p0 }
 0x376   :  { %1207 = vmatpush3.msra.mxu1 %v1656_v52 }
 0x377   :  { %1208 = vmatprep.subr.mxu1 %v1955_v23 }
 0x378   :  { %1209 = vmatpush3.msra.mxu1 %v1669_v55 }
 0x379   :  { %1210 = vmatprep.subr.mxu1 %v1955_v23 }
 0x37a   :  { %1211 = vmatpush3.msra.mxu1 %v1679_v57 }
 0x37b   :  { %1212 = vmatprep.subr.mxu1 %v1955_v23 }
 0x37c   :  { %1213 = vmatpush3.msra.mxu1 %v1687_v58 }
 0x37d   :  { %1214 = vmatprep.subr.mxu1 %v1955_v23 }
 0x37e   :  { %1215 = vmatpush3.msra.mxu1 %v1694_v59 }
 0x37f   :  { %1216 = vmatprep.subr.mxu1 %v1955_v23 }
 0x380   :  { %1217 = vmatpush3.msra.mxu1 %v1701_v60 }
 0x381   :  { %1218 = vmatprep.subr.mxu1 %v1955_v23 }
 0x382   :  { %1219 = vmatpush3.msra.mxu1 %v1708_v61 }
 0x383   :  { %1220 = vmatprep.subr.mxu1 %v1955_v23 }
 0x384   :  { %1221 = vmatpush3.msra.mxu1 %v1715_v62 }
 0x385   :  { %1222 = vmatprep.subr.mxu1 %v1955_v23 }
 0x386   :  { %1223 = vmatpush3.msra.mxu1 %v1722_v63 }
 0x387   :  { %1224 = vmatprep.subr.mxu1 %v1955_v23 }
 0x388   :  { %1225 = vmatpush3.msra.mxu1 %v1729_v2 }
 0x409   :  { %v463_v34 = vpop.f32.mrf.mxu1 }
 0x40a   :  { %467 = vst [vmem:[#allocation2] sm:$0x1] %v463_v34 }
 0x40b   :  { %v1102_v37 = vpop.f32.mrf.mxu1 }
 0x429   :  { %v714_v43 = vpop.f32.mrf.mxu1 }
 0x42a   :  { %v715_v46 = vadd.f32 %v714_v43, %v647_v40 }
 0x42b   :  { %v1193_v49 = vpop.f32.mrf.mxu1 }
 0x42c   :  { %v718_v52 = vsel %vm385_vm1, %v715_v46, -inf }
 0x42d   :  { %719 = vmax.xlane.f32.xlu0 %v718_v52 }
 0x4b6   :  { %v720_v55 = vpop.xlane.xlu0 %719 }
 0x4b7   :  { %v721_v57 = vsub.f32 %v715_v46, %v720_v55 }
 0x4b9   :  { %v722_v58 = vmul.f32 1.442695, %v721_v57 }
 0x4bb   :  { %1304 = vpow2.f32 %v722_v58 }
 0x4c8   :  { %v1305_v59 = vpop.eup %1304 }
 0x4c9   :  { %v724_v60 = vsel %vm385_vm1, %v1305_v59, 0.0 }
 0x4ca   :  { %725 = vadd.xlane.f32.xlu0 %v724_v60 }
 0x553   :  { %v726_v61 = vpop.xlane.xlu0 %725 }
 0x554   :  { %1306 = vrcp.f32 %v726_v61 }
 0x561   :  { %v1307_v62 = vpop.eup %1306 }
 0x562   :  { %v728_v63 = vmul.f32 %v1307_v62, %v1305_v59 }
 0x564   :  { %1227 = vmatmul.mubr.f32.vlgmr.msra.gmra.mxu1 %v728_v63  ;;  %800 = vst [vmem:[#allocation4 + $0x1] sm:$0x1] %v728_v63 }
 0x565   :  { %1319 = shalt.err (!%p1316_p4)
}
 0x566   :  { %820 = dma.vmem_to_hbm [thread:$0]  %s818_s29, 32, %s1952_s6, [#allocation5]  }
 0x567   :  { %s1356_s9 = smov [#allocation2]  }
 0x568   :  { %s807_s10 = sshll.u32 %s1356_s9, 4  ;;  %s808_s10 = int_to_ptr.vmem [resolvable:$true] %s807_s10 }
 0x569   :  { %s1328_s3 = scalar_lea.vmem %s808_s10, 32  ;;  %p1333_p6 = scmp.lt.s32.totalorder %s808_s10, %s808_s10 }
 0x56a   :  { %p1329_p5 = scmp.ne.s32.totalorder %s808_s10, %s1328_s3  ;;  %p1334_p7 = scmp.lt.s32.totalorder %s1328_s3, %s1328_s3 }
 0x56c   :  { %p1335_p8 = por %p1334_p7, %p1333_p6 }
 0x56e   :  { %p1336_p9 = pnand %p1335_p8, %p1329_p5 }
 0x624   :  { %v795_v2 = vpop.f32.mrf.mxu1 }
 0x625   :  { %799 = vst [vmem:[#allocation2 + $0x1] sm:$0x1] %v795_v2 }
 0x626   :  { %v1228_v23 = vpop.f32.mrf.mxu1 }
 0x627   :  { %1339 = shalt.err (!%p1336_p9)
}
 0x628   :  { %810 = dma.vmem_to_hbm [thread:$0]  %s808_s10, 32, %s1951_s5, [#allocation3]  }
 0x629   :  { %1348 = dma.done.wait [#allocation3], 32  }
 0x62a   :  { %1349 = vsyncadd [#allocation3], 4294967264 }
 0x62b   :  { %1350 = dma.done.wait [#allocation5], 32  }
 0x62c   :  { %1351 = vsyncadd [#allocation5], 4294967264 }
 0x62d   :  { %827 = vsyncpa [#allocation3], 1 }
 0x62e   :  { %828 = vsyncpa [#allocation5], 1 }

</bundles_post_ra>
